<compile_context>
chip_gen: v7x
topology: tpu7x:2x2x1
jax: 0.10.0
libtpu: 0.0.40
codegen_flags: <defaults>
</compile_context>

<pallas_src>
import math

import jax
import jax.numpy as jnp
from jax.experimental import pallas as pl
from jax.experimental.pallas import tpu as pltpu


def text_model_kernel(ids_ref, w1p_ref, b1_ref, w2_ref, b2_ref, o_ref):
    ids = ids_ref[...]                            # (TILE_B, S) int32
    tile_b, seq = ids.shape
    vocab = w1p_ref.shape[0]

    # --- token-count one-hot (embedding lookup + mean pool, with emb & 1/S
    #     pre-folded into W1p).  Accumulate in int32, convert once at the end.
    vocab_iota = jax.lax.broadcasted_iota(jnp.int32, (tile_b, vocab), 1)
    counts = jnp.zeros((tile_b, vocab), jnp.int32)
    for s in range(seq):                          # S small & static -> unrolled VPU compares
        counts = counts + (ids[:, s:s + 1] == vocab_iota).astype(jnp.int32)
    counts_f = counts.astype(jnp.float32)
    if w1p_ref.dtype != jnp.float32:              # static branch (trace time)
        counts_f = counts_f.astype(w1p_ref.dtype)

    # --- fused MLP: counts @ W1p + b1 -> ReLU -> @ W2p + b2 (f32 accumulate) ---
    h = jnp.dot(counts_f, w1p_ref[...], preferred_element_type=jnp.float32) + b1_ref[...]
    h = jnp.maximum(h, 0.0)
    y = jnp.dot(h.astype(w2_ref.dtype), w2_ref[...],
                preferred_element_type=jnp.float32) + b2_ref[...]
    o_ref[...] = y.astype(o_ref.dtype)


def prepare_text_model_params(emb_table, w1, b1, w2, b2, seq_len,
                              compute_dtype=jnp.float32):
    """One-time (model-init) prep: fold frozen embedding + mean into W1, lane-pad output."""
    V, E = emb_table.shape
    D_hid = w1.shape[1]
    D_out = w2.shape[1]
    D_out_pad = ((D_out + 127) // 128) * 128

    # Fold: mean_s(emb[ids[:,s]]) @ W1 == counts @ ((emb @ W1) / S)
    w1p = (emb_table.astype(jnp.float32) @ w1.astype(jnp.float32)) / float(seq_len)
    w1p = w1p.astype(compute_dtype)                                     # (V, D_hid)

    w2p = jnp.zeros((D_hid, D_out_pad), compute_dtype)
    w2p = w2p.at[:, :D_out].set(w2.astype(compute_dtype))               # lane-padded
    b1r = b1.reshape(1, D_hid).astype(jnp.float32)                      # biases stay f32
    b2p = jnp.zeros((1, D_out_pad), jnp.float32)
    b2p = b2p.at[:, :D_out].set(b2.reshape(1, -1).astype(jnp.float32))

    return {"w1p": w1p, "b1": b1r, "w2": w2p, "b2": b2p, "d_out": D_out}


def _choose_tile_b(B, max_tile_b=1024):
    """>=2 batch tiles so megacore sharding + pipelining engage; 128-multiples when B allows."""
    if B >= 256:
        tile = ((B + 1) // 2 + 127) // 128 * 128   # ~B/2, rounded up to 128
        tile = max(128, min(max_tile_b, tile))
    else:
        tile = max(8, (((B + 1) // 2) + 7) // 8 * 8)
    return tile


def text_model_forward(ids, params, *, max_tile_b=1024):
    """ids: (B, S) int32 token ids. Returns (B, D_out) f32 logits of the MLP head."""
    B, S = ids.shape
    w1p, b1, w2p, b2p = params["w1p"], params["b1"], params["w2"], params["b2"]
    V, D_hid = w1p.shape
    D_out_pad = w2p.shape[1]

    tile_b = _choose_tile_b(B, max_tile_b)
    n_tiles = pl.cdiv(B, tile_b)
    B_pad = n_tiles * tile_b
    ids_p = ids if B_pad == B else jnp.pad(ids, ((0, B_pad - B), (0, 0)))

    out = pl.pallas_call(
        text_model_kernel,
        out_shape=jax.ShapeDtypeStruct((B_pad, D_out_pad), jnp.float32),
        grid=(n_tiles,),
        in_specs=[
            pl.BlockSpec((tile_b, S), lambda i: (i, 0)),          # token ids: tiled over batch
            pl.BlockSpec((V, D_hid), lambda i: (0, 0)),           # W1p (emb folded in): resident
            pl.BlockSpec((1, D_hid), lambda i: (0, 0)),           # b1: resident
            pl.BlockSpec((D_hid, D_out_pad), lambda i: (0, 0)),   # W2 (lane-padded): resident
            pl.BlockSpec((1, D_out_pad), lambda i: (0, 0)),       # b2 (lane-padded): resident
        ],
        out_specs=pl.BlockSpec((tile_b, D_out_pad), lambda i: (i, 0)),
        compiler_params=pltpu.CompilerParams(
            dimension_semantics=("parallel",),      # megacore sharding on v7x
            vmem_limit_bytes=32 * 1024 * 1024,      # explicit limit; usage here is tiny
        ),
    )(ids_p, w1p, b1, w2p, b2p)

    return out[:B, :params["d_out"]]


def kaiming_uniform(key, fan_in, shape, dtype=jnp.float32):
    # PyTorch kaiming_uniform_ default (a=sqrt(5)): gain = sqrt(2/6), bound = gain*sqrt(3/fan_in)
    gain = math.sqrt(2.0 / (1.0 + 5.0))
    bound = gain * math.sqrt(3.0 / fan_in)
    return jax.random.uniform(key, shape, dtype, minval=-bound, maxval=bound)


if __name__ == "__main__":
    key = jax.random.PRNGKey(0)
    k_ids, k_emb, k_w1, k_b1, k_w2, k_b2 = jax.random.split(key, 6)

    # Small shapes consistent with TextModel(input_dim=(S,...), output_dim, emb_dim):
    B, S, V, E = 64, 8, 64, 32        # batch, seq len, vocab size, emb_dim
    D_hid, D_out = 128, 16            # dense_layer_sizes=[128], output_dim=16

    ids = jax.random.randint(k_ids, (B, S), 0, V, dtype=jnp.int32)
    emb_table = jax.random.normal(k_emb, (V, E), dtype=jnp.float32)

    # Weights stored (in, out): kernel does x @ W (== PyTorch x @ weight.T).
    w1 = kaiming_uniform(k_w1, E, (E, D_hid))
    b1 = jax.random.uniform(k_b1, (D_hid,), jnp.float32,
                            minval=-1.0 / math.sqrt(E), maxval=1.0 / math.sqrt(E))
    w2 = kaiming_uniform(k_w2, D_hid, (D_hid, D_out))
    b2 = jax.random.uniform(k_b2, (D_out,), jnp.float32,
                            minval=-1.0 / math.sqrt(D_hid), maxval=1.0 / math.sqrt(D_hid))

    # Pure-JAX reference of the same forward pass (embedding -> mean pool -> MLP).
    pooled = emb_table[ids].mean(axis=1)
    ref = jnp.maximum(pooled @ w1 + b1, 0.0) @ w2 + b2

    # --- f32 path (strict numerics check) ---
    params_f32 = prepare_text_model_params(emb_table, w1, b1, w2, b2, S,
                                           compute_dtype=jnp.float32)
    y = jax.block_until_ready(text_model_forward(ids, params_f32))
    assert y.shape == (B, D_out)
    assert jnp.allclose(y, ref, atol=1e-4, rtol=1e-4), float(jnp.abs(y - ref).max())

    # --- bf16-weight path (v6e/v7x MXU-friendly; f32 accumulate, loose check) ---
    params_bf16 = prepare_text_model_params(emb_table, w1, b1, w2, b2, S,
                                            compute_dtype=jnp.bfloat16)
    y_bf16 = jax.block_until_ready(text_model_forward(ids, params_bf16))
    assert y_bf16.shape == (B, D_out)
    assert jnp.allclose(y_bf16, ref, atol=1e-1, rtol=1e-1), \
        float(jnp.abs(y_bf16 - ref).max())

    print("KERNEL_OK")
</pallas_src>

<mosaic_0001>
module attributes {stable_mosaic.version = 11 : i64} {
  func.func @text_model_kernel(%arg0: i32, %arg1: memref<32x8xi32, #tpu.memory_space<vmem>>, %arg2: memref<64x128xf32, #tpu.memory_space<vmem>>, %arg3: memref<1x128xf32, #tpu.memory_space<vmem>>, %arg4: memref<128x128xf32, #tpu.memory_space<vmem>>, %arg5: memref<1x128xf32, #tpu.memory_space<vmem>>, %arg6: memref<32x128xf32, #tpu.memory_space<vmem>>) attributes {dimension_semantics = [#tpu.dimension_semantics<parallel>], iteration_bounds = array<i64: 2>, scalar_prefetch = 0 : i64, scratch_operands = 0 : i64, tpu.core_type = #tpu.core_type<tc>, window_params = [{transform_indices = @transform_0, window_bounds = array<i64: 32, 8>}, {pipeline_mode = #tpu.pipeline_mode<synchronous>, transform_indices = @transform_1, window_bounds = array<i64: 64, 128>}, {pipeline_mode = #tpu.pipeline_mode<synchronous>, transform_indices = @transform_2, window_bounds = array<i64: 1, 128>}, {pipeline_mode = #tpu.pipeline_mode<synchronous>, transform_indices = @transform_3, window_bounds = array<i64: 128, 128>}, {pipeline_mode = #tpu.pipeline_mode<synchronous>, transform_indices = @transform_4, window_bounds = array<i64: 1, 128>}, {transform_indices = @transform_5, window_bounds = array<i64: 32, 128>}]} {
    %c0 = arith.constant 0 : index
    %c0_0 = arith.constant 0 : index
    %0 = vector.load %arg1[%c0, %c0_0] : memref<32x8xi32, #tpu.memory_space<vmem>>, vector<32x8xi32>
    %1 = tpu.iota {dimensions = array<i32: 1>} : vector<32x64xi32>
    %c0_i32 = arith.constant 0 : i32
    %2 = vector.broadcast %c0_i32 : i32 to vector<32x64xi32>
    %3 = vector.extract_strided_slice %0 {offsets = [0, 0], sizes = [32, 1], strides = [1, 1]} : vector<32x8xi32> to vector<32x1xi32>
    %4 = vector.broadcast %3 : vector<32x1xi32> to vector<32x64xi32>
    %5 = arith.cmpi eq, %4, %1 : vector<32x64xi32>
    %6 = arith.extui %5 : vector<32x64xi1> to vector<32x64xi32>
    %7 = arith.addi %2, %6 : vector<32x64xi32>
    %8 = vector.extract_strided_slice %0 {offsets = [0, 1], sizes = [32, 1], strides = [1, 1]} : vector<32x8xi32> to vector<32x1xi32>
    %9 = vector.broadcast %8 : vector<32x1xi32> to vector<32x64xi32>
    %10 = arith.cmpi eq, %9, %1 : vector<32x64xi32>
    %11 = arith.extui %10 : vector<32x64xi1> to vector<32x64xi32>
    %12 = arith.addi %7, %11 : vector<32x64xi32>
    %13 = vector.extract_strided_slice %0 {offsets = [0, 2], sizes = [32, 1], strides = [1, 1]} : vector<32x8xi32> to vector<32x1xi32>
    %14 = vector.broadcast %13 : vector<32x1xi32> to vector<32x64xi32>
    %15 = arith.cmpi eq, %14, %1 : vector<32x64xi32>
    %16 = arith.extui %15 : vector<32x64xi1> to vector<32x64xi32>
    %17 = arith.addi %12, %16 : vector<32x64xi32>
    %18 = vector.extract_strided_slice %0 {offsets = [0, 3], sizes = [32, 1], strides = [1, 1]} : vector<32x8xi32> to vector<32x1xi32>
    %19 = vector.broadcast %18 : vector<32x1xi32> to vector<32x64xi32>
    %20 = arith.cmpi eq, %19, %1 : vector<32x64xi32>
    %21 = arith.extui %20 : vector<32x64xi1> to vector<32x64xi32>
    %22 = arith.addi %17, %21 : vector<32x64xi32>
    %23 = vector.extract_strided_slice %0 {offsets = [0, 4], sizes = [32, 1], strides = [1, 1]} : vector<32x8xi32> to vector<32x1xi32>
    %24 = vector.broadcast %23 : vector<32x1xi32> to vector<32x64xi32>
    %25 = arith.cmpi eq, %24, %1 : vector<32x64xi32>
    %26 = arith.extui %25 : vector<32x64xi1> to vector<32x64xi32>
    %27 = arith.addi %22, %26 : vector<32x64xi32>
    %28 = vector.extract_strided_slice %0 {offsets = [0, 5], sizes = [32, 1], strides = [1, 1]} : vector<32x8xi32> to vector<32x1xi32>
    %29 = vector.broadcast %28 : vector<32x1xi32> to vector<32x64xi32>
    %30 = arith.cmpi eq, %29, %1 : vector<32x64xi32>
    %31 = arith.extui %30 : vector<32x64xi1> to vector<32x64xi32>
    %32 = arith.addi %27, %31 : vector<32x64xi32>
    %33 = vector.extract_strided_slice %0 {offsets = [0, 6], sizes = [32, 1], strides = [1, 1]} : vector<32x8xi32> to vector<32x1xi32>
    %34 = vector.broadcast %33 : vector<32x1xi32> to vector<32x64xi32>
    %35 = arith.cmpi eq, %34, %1 : vector<32x64xi32>
    %36 = arith.extui %35 : vector<32x64xi1> to vector<32x64xi32>
    %37 = arith.addi %32, %36 : vector<32x64xi32>
    %38 = vector.extract_strided_slice %0 {offsets = [0, 7], sizes = [32, 1], strides = [1, 1]} : vector<32x8xi32> to vector<32x1xi32>
    %39 = vector.broadcast %38 : vector<32x1xi32> to vector<32x64xi32>
    %40 = arith.cmpi eq, %39, %1 : vector<32x64xi32>
    %41 = arith.extui %40 : vector<32x64xi1> to vector<32x64xi32>
    %42 = arith.addi %37, %41 : vector<32x64xi32>
    %43 = arith.sitofp %42 : vector<32x64xi32> to vector<32x64xf32>
    %c0_1 = arith.constant 0 : index
    %c0_2 = arith.constant 0 : index
    %44 = vector.load %arg2[%c0_1, %c0_2] : memref<64x128xf32, #tpu.memory_space<vmem>>, vector<64x128xf32>
    %cst = arith.constant dense<0.000000e+00> : vector<32x128xf32>
    %45 = tpu.matmul %43, %44, %cst {dimension_numbers = #tpu.dot_dimension_numbers<[1], [0], [0], [1], [0, 0, 1, 1], [], []>} : vector<32x64xf32>, vector<64x128xf32>, vector<32x128xf32> -> vector<32x128xf32>
    %c0_3 = arith.constant 0 : index
    %c0_4 = arith.constant 0 : index
    %46 = vector.load %arg3[%c0_3, %c0_4] : memref<1x128xf32, #tpu.memory_space<vmem>>, vector<1x128xf32>
    %47 = vector.broadcast %46 : vector<1x128xf32> to vector<32x128xf32>
    %48 = arith.addf %45, %47 : vector<32x128xf32>
    %cst_5 = arith.constant 0.000000e+00 : f32
    %49 = vector.broadcast %cst_5 : f32 to vector<32x128xf32>
    %50 = arith.maximumf %48, %49 : vector<32x128xf32>
    %c0_6 = arith.constant 0 : index
    %c0_7 = arith.constant 0 : index
    %51 = vector.load %arg4[%c0_6, %c0_7] : memref<128x128xf32, #tpu.memory_space<vmem>>, vector<128x128xf32>
    %cst_8 = arith.constant dense<0.000000e+00> : vector<32x128xf32>
    %52 = tpu.matmul %50, %51, %cst_8 {dimension_numbers = #tpu.dot_dimension_numbers<[1], [0], [0], [1], [0, 0, 1, 1], [], []>} : vector<32x128xf32>, vector<128x128xf32>, vector<32x128xf32> -> vector<32x128xf32>
    %c0_9 = arith.constant 0 : index
    %c0_10 = arith.constant 0 : index
    %53 = vector.load %arg5[%c0_9, %c0_10] : memref<1x128xf32, #tpu.memory_space<vmem>>, vector<1x128xf32>
    %54 = vector.broadcast %53 : vector<1x128xf32> to vector<32x128xf32>
    %55 = arith.addf %52, %54 : vector<32x128xf32>
    %c0_11 = arith.constant 0 : index
    %c0_12 = arith.constant 0 : index
    %56 = vector.load %arg6[%c0_11, %c0_12] : memref<32x128xf32, #tpu.memory_space<vmem>>, vector<32x128xf32>
    tpu.vector_store %arg6[%c0_11, %c0_12], %55 {strides = array<i32>} : memref<32x128xf32, #tpu.memory_space<vmem>>, vector<32x128xf32>,
    return
  }
  func.func @transform_0(%arg0: i32) -> (i32, i32) {
    %c0_i32 = arith.constant 0 : i32
    %c0_i32_0 = arith.constant 0 : i32
    return %arg0, %c0_i32 : i32, i32
  }
  func.func @transform_1(%arg0: i32) -> (i32, i32) {
    %c0_i32 = arith.constant 0 : i32
    %c0_i32_0 = arith.constant 0 : i32
    %c0_i32_1 = arith.constant 0 : i32
    return %c0_i32, %c0_i32_0 : i32, i32
  }
  func.func @transform_2(%arg0: i32) -> (i32, i32) {
    %c0_i32 = arith.constant 0 : i32
    %c0_i32_0 = arith.constant 0 : i32
    %c0_i32_1 = arith.constant 0 : i32
    return %c0_i32, %c0_i32_0 : i32, i32
  }
  func.func @transform_3(%arg0: i32) -> (i32, i32) {
    %c0_i32 = arith.constant 0 : i32
    %c0_i32_0 = arith.constant 0 : i32
    %c0_i32_1 = arith.constant 0 : i32
    return %c0_i32, %c0_i32_0 : i32, i32
  }
  func.func @transform_4(%arg0: i32) -> (i32, i32) {
    %c0_i32 = arith.constant 0 : i32
    %c0_i32_0 = arith.constant 0 : i32
    %c0_i32_1 = arith.constant 0 : i32
    return %c0_i32, %c0_i32_0 : i32, i32
  }
  func.func @transform_5(%arg0: i32) -> (i32, i32) {
    %c0_i32 = arith.constant 0 : i32
    %c0_i32_0 = arith.constant 0 : i32
    return %arg0, %c0_i32 : i32, i32
  }
}

</mosaic_0001>

<bundles_post_ra>
// kernel: tpu_custom_call.1
= control target key start
LH: loop header
LB: loop body
LE: loop exit
PB: predicated region body
PF: predicated region fallthrough
CT: control target
= control target key end

     0   :  { %10 = vsyncpa [#allocation3], 0  ;;  %s1439_s0 = inlined_call_operand.vmem [shape: s32[64,8], index: 0, kind: input, shape index: {}]   ;;  %s1440_s1 = inlined_call_operand.vmem [shape: f32[64,128], index: 1, kind: input, shape index: {}]   ;;  %s1441_s2 = inlined_call_operand.vmem [shape: f32[1,128], index: 2, kind: input, shape index: {}]   ;;  %s1442_s3 = inlined_call_operand.hbm [shape: f32[128,128], index: 3, kind: input, shape index: {}]   ;;  %s1443_s4 = inlined_call_operand.vmem [shape: f32[1,128], index: 4, kind: input, shape index: {}]   ;;  %s1444_s5 = inlined_call_operand.hbm [shape: f32[64,128], index: 5, kind: output, shape index: {}]  }
   0x1   :  { %11 = vsyncpa [#allocation4], 0 }
   0x2   :  { %13 = vsyncpa [#allocation4 + $0x1], 0  ;;  %s1145_s18 = smov 0   ;;  %s1147_s19 = smov 0  }
   0x3   :  { %s1149_s20 = smov 0   ;;  %s1151_s21 = smov 0  }
   0x4 LB: > { %s1166_s22 = sadd.s32 4294967295, %s1099_s21   ;;  %s756_s23 = sadd.s32 4294967294, %s1099_s21   ;;  %s1099_s21 = sphi %s1151_s21, %s1460_s21   ;;  %s1095_s20 = sphi %s1149_s20, %s1459_s20   ;;  %s1091_s19 = sphi %s1147_s19, %s1458_s19   ;;  %s1087_s18 = sphi %s1145_s18, %s1457_s18  }
   0x5   : > { %s1170_s24 = sadd.s32 1, %s1099_s21   ;;  %s136_s25 = sadd.s32 1, %s1095_s20 }
   0x6   : > { %s133_s26 = ssub.s32 %s1099_s21, %s1170_s24  ;;  %p146_p0 = scmp.ne.s32.totalorder %s1095_s20, %s1091_s19 }
   0x7   : > { %p134_p1 = scmp.eq.s32.totalorder %s133_s26, 0  ;;  %p147_p2 = scmp.eq.s32.totalorder %s1166_s22, 1 }
   0x8   : > { %p152_p3 = scmp.ne.s32.totalorder %s1091_s19, %s1087_s18  ;;  %p153_p4 = scmp.eq.s32.totalorder %s756_s23, 1 }
   0x9   : > { %s1181_s27 = scalar_select %p134_p1, %s1095_s20, %s136_s25  }
   0xa   : > { %p1183_p5 = por %p147_p2, %p146_p0  ;;  %p1187_p6 = por %p153_p4, %p152_p3 }
   0xb   : > { %p757_p7 = scmp.ge.s32.totalorder %s1099_s21, 1  ;;  %p160_p8 = scmp.lt.s32.totalorder %s1099_s21, 3 }
   0xc   : > { %s1448_s28 = scalar_select %p1183_p5, 1, 0 }
   0xd   : > { %s1449_s29 = scalar_select %p1187_p6, 1, 0 }
   0xe   : > { %p1445_p9 = scmp.eq.s32.totalorder %s1166_s22, 0  ;;  %p1194_p10 = pnand %p757_p7, %p160_p8 }
   0xf   : > { %s1101_s6 = smov [#allocation2]   ;;  %s1005_s11 = scalar_lea.hbm %s1442_s3, 2048 }
  0x10   : > { %s1450_s30 = scalar_select %p1194_p10, 1, 0 }
  0x11   : > { %s178_s7 = sshll.u32 %s1101_s6, 4  ;;  %p923_p11 = pneg %p1194_p10  ;;  %s179_s7 = int_to_ptr.vmem [resolvable:$true] %s178_s7 }
  0x12   : > { %p1006_p13 = scmp.ne.s32.totalorder %s1442_s3, %s1005_s11  ;;  %p1012_p3 = scmp.lt.u32.totalorder %s1005_s11, %s1442_s3 }
  0x13   : > { %p1202_p12 = pnand %p1445_p9, %p923_p11 }
  0x15   : > { %p1007_p0 = pneg %p1202_p12 }
  0x17   : > { %p1008_p1 = pnand %p1007_p0, %p1006_p13 }
  0x19   : > { %p1009_p2 = pneg %p1008_p1 }
  0x1b   : > { %p1014_p4 = pnand %p1012_p3, %p1009_p2 }
  0x1d   : > { %1017 = shalt.err (!%p1014_p4)
}
  0x1e   : > { %s1018_s16 = scalar_lea.vmem %s179_s7, 2048  ;;  %p1026_p9 = scmp.lt.s32.totalorder %s179_s7, %s179_s7 }
  0x1f   : > { %p1019_p7 = scmp.ne.s32.totalorder %s179_s7, %s1018_s16  ;;  %p1027_p6 = scmp.lt.s32.totalorder %s1018_s16, %s1018_s16 }
  0x21   : > { %p1021_p8 = pnand %p1019_p7, %p1007_p0  ;;  %p1028_p5 = por %p1027_p6, %p1026_p9 }
  0x23   : > { %p1022_p11 = pneg %p1021_p8 }
  0x25   : > { %p1029_p10 = pnand %p1028_p5, %p1022_p11 }
  0x27   : > { %1032 = shalt.err (!%p1029_p10)
}
  0x28   : > { %s1102_s17 = smov 128   ;;  %s1103_s23 = smov 8  }
  0x29   : > { %926 = dma.hbm_to_vmem [thread:$0]  (!%p1202_p12), %s1442_s3, 2048, %s179_s7, [#allocation3], %s1102_s17, %s1102_s17, %s1103_s23  }
  0x2a   : > { %p1452_p13 = scmp.ne.s32.totalorder %s1450_s30, 0 }
  0x2b   : > { %p1453_p1 = scmp.eq.s32.totalorder (!%p1452_p13), %s1166_s22, 0 }
  0x2c   : > { %206 = sbr.rel (%p1452_p13) target bundleno = 734 (0x2de), region = 40 }
  0x33   : > { %1078 = dma.done.wait (%p1453_p1), [#allocation3], 2048   ;;  %p1454_p0 = pmov %p1453_p1 }
  0x34   : > { %s763_s6 = sshll.u32 %s1166_s22, 2  ;;  %v1104_v0 = vmov 0   ;;  %v1105_v3 = vmov 1   ;;  %v1106_v4 = vmov 2   ;;  %v1107_v6 = vmov 3   ;;  %v439_v12 = vld [vmem:[%s1440_s1] sm:$0xff] }
  0x35   : > { %1080 = vsyncadd (%p1454_p0), [#allocation3], 4294965248  ;;  %981 = vset.pattern.permute.xlu1 %v1104_v0  ;;  %979 = vset.pattern.permute.xlu0 %v1104_v0  ;;  %p235_p5 = scmp.lt.s32.totalorder %s763_s6, 7  ;;  %v1108_v8 = vmov 5   ;;  %v1109_v9 = vmov 4   ;;  %v1110_v10 = vmov 7   ;;  %v245_v60 = vlaneseq }
  0x36   : > { %v1111_v11 = vmov 6   ;;  %v440_v13 = vld [vmem:[%s1440_s1 + $0x8] sm:$0xff]  ;;  %v441_v15 = vld [vmem:[%s1440_s1 + $0x10] sm:$0xff]  ;;  %v442_v16 = vld [vmem:[%s1440_s1 + $0x18] sm:$0xff]  ;;  %vm454_vm12 = vcmask 523264   ;;  %s231_s12 = sand.u32 1, %s1091_s19  }
  0x37   : > { %s1462_s6 = smov (!%p235_p5, %s763_s6), 7  ;;  %v869_v14 = vpack.c.bf16 %v440_v13, %v439_v12  ;;  %v873_v17 = vpack.c.bf16 %v442_v16, %v441_v15  ;;  %v443_v18 = vld [vmem:[%s1440_s1 + $0x20] sm:$0xff]  ;;  %v444_v19 = vld [vmem:[%s1440_s1 + $0x28] sm:$0xff]  ;;  %v445_v21 = vld [vmem:[%s1440_s1 + $0x30] sm:$0xff]  ;;  %v1296_v63 = vand.u32 127, %v245_v60  ;;  %s762_s13 = sshll.u32 %s231_s12, 5 }
  0x38   : > { %s764_s8 = sshll.u32 %s1462_s6, 3  ;;  %v877_v20 = vpack.c.bf16 %v444_v19, %v443_v18  ;;  %v446_v22 = vld [vmem:[%s1440_s1 + $0x38] sm:$0xff]  ;;  %v556_v24 = vld [vmem:[#allocation2] sm:$0xff]  ;;  %v557_v25 = vld [vmem:[#allocation2 + $0x8] sm:$0xff]  ;;  %s233_s16 = scalar_lea.vmem [#allocation5], %s762_s13 }
  0x39   : > { %s238_s30 = scalar_lea.vmem %s1439_s0, %s764_s8  ;;  %870 = vmatprep.subr.bf16.mxu0 %v869_v14  ;;  %v881_v23 = vpack.c.bf16 %v446_v22, %v445_v21  ;;  %v558_v26 = vld [vmem:[#allocation2 + $0x10] sm:$0xff]  ;;  %v885_v27 = vpack.c.bf16 %v557_v25, %v556_v24  ;;  %v559_v28 = vld [vmem:[#allocation2 + $0x18] sm:$0xff]  ;;  %v560_v30 = vld [vmem:[#allocation2 + $0x20] sm:$0xff]  ;;  %s682_s17 = sshll.u32 %s233_s16, 4  ;;  %s1391_s17 = int_to_ptr.vmem [resolvable:$true] %s682_s17 }
  0x3a   : > { %v1234_v1 = vld [vmem:[%s238_s30 + $0x8] sm:$0xff]  ;;  %v241_v2 = vld [vmem:[%s238_s30] sm:$0xff]  ;;  %v1239_v5 = vld [vmem:[%s238_s30 + $0x10] sm:$0xff]  ;;  %872 = vmatpush3.bf16.msra.mxu0 %v869_v14  ;;  %v889_v29 = vpack.c.bf16 %v559_v28, %v558_v26  ;;  %s776_s23 = sshll.u32 %s1166_s22, 9  ;;  %s1398_s8 = scalar_lea.sflag [#allocation4], %s231_s12 }
  0x3b   : > { %251 = vperm.xlu1 %981, %v1234_v1   ;;  %248 = vperm.xlu0 %979, %v241_v2   ;;  %v244_v7 = vld [vmem:[%s238_s30 + $0x18] sm:$0xff]  ;;  %v561_v31 = vld [vmem:[#allocation2 + $0x28] sm:$0xff]  ;;  %v562_v33 = vld [vmem:[#allocation2 + $0x30] sm:$0xff]  ;;  %s1396_s6 = scalar_lea.hbm %s1444_s5, %s776_s23  ;;  %s1033_s7 = scalar_lea.vmem %s1391_s17, 512 }
  0x3c   : > { %874 = vmatprep.subr.bf16.mxu0 %v873_v17  ;;  %886 = vmatprep.subr.bf16.mxu1 %v885_v27  ;;  %v893_v32 = vpack.c.bf16 %v561_v31, %v560_v30  ;;  %v563_v34 = vld [vmem:[#allocation2 + $0x38] sm:$0xff]  ;;  %v564_v36 = vld [vmem:[#allocation2 + $0x40] sm:$0xff]  ;;  %v565_v37 = vld [vmem:[#allocation2 + $0x48] sm:$0xff]  ;;  %p1034_p6 = scmp.ne.s32.totalorder %s1391_s17, %s1033_s7  ;;  %p1455_p9 = scmp.ne.s32.totalorder %s1448_s28, 0 }
  0x3d   : > { %888 = vmatpush3.bf16.msra.mxu1 %v885_v27  ;;  %v897_v35 = vpack.c.bf16 %v563_v34, %v562_v33  ;;  %v901_v38 = vpack.c.bf16 %v565_v37, %v564_v36  ;;  %v566_v39 = vld [vmem:[#allocation2 + $0x50] sm:$0xff]  ;;  %v567_v40 = vld [vmem:[#allocation2 + $0x58] sm:$0xff]  ;;  %v568_v42 = vld [vmem:[#allocation2 + $0x60] sm:$0xff]  ;;  %s1112_s22 = smov [#allocation5]  }
  0x3e   : > { %876 = vmatpush3.bf16.msra.mxu0 %v873_v17  ;;  %890 = vmatprep.subr.bf16.mxu1 %v889_v29  ;;  %v905_v41 = vpack.c.bf16 %v567_v40, %v566_v39  ;;  %v569_v43 = vld [vmem:[#allocation2 + $0x68] sm:$0xff]  ;;  %p1035_p10 = pnand %p1034_p6, %p1455_p9  ;;  %s1037_s9 = sshll.u32 %s1112_s22, 4  ;;  %s1038_s9 = int_to_ptr.vmem [resolvable:$false] %s1037_s9 }
  0x3f   : > { %982 = vset.pattern.permute.xlu1 %v1105_v3  ;;  %980 = vset.pattern.permute.xlu0 %v1105_v3  ;;  %v909_v44 = vpack.c.bf16 %v569_v43, %v568_v42  ;;  %s1039_s30 = scalar_lea.vmem %s1038_s9, 1024  ;;  %p1040_p2 = scmp.lt.s32.totalorder %s1391_s17, %s1038_s9 }
  0x40   : > { %271 = vperm.xlu1 %982, %v1234_v1   ;;  %268 = vperm.xlu0 %980, %v241_v2   ;;  %p1036_p12 = pneg %p1035_p10  ;;  %p1041_p3 = scmp.lt.s32.totalorder %s1039_s30, %s1033_s7 }
  0x41   : > { %878 = vmatprep.subr.bf16.mxu0 %v877_v20  ;;  %892 = vmatpush3.bf16.msra.mxu1 %v889_v29 }
  0x42   : > { %880 = vmatpush3.bf16.msra.mxu0 %v877_v20  ;;  %894 = vmatprep.subr.bf16.mxu1 %v893_v32  ;;  %p1042_p4 = por %p1041_p3, %p1040_p2 }
  0x43   : > { %882 = vmatprep.subr.bf16.mxu0 %v881_v23 }
  0x44   : > { %983 = vset.pattern.permute.xlu1 %v1106_v4  ;;  %984 = vset.pattern.permute.xlu0 %v1106_v4  ;;  %p1043_p7 = pnand %p1042_p4, %p1036_p12 }
  0x45   : > { %292 = vperm.xlu1 %983, %v241_v2   ;;  %295 = vperm.xlu0 %984, %v1234_v1  }
  0x46   : > { %884 = vmatpush3.bf16.msra.mxu0 %v881_v23  ;;  %896 = vmatpush3.bf16.msra.mxu1 %v893_v32 }
  0x47   : > { %898 = vmatprep.subr.bf16.mxu1 %v897_v35 }
  0x49   : > { %985 = vset.pattern.permute.xlu1 %v1104_v0  ;;  %987 = vset.pattern.permute.xlu0 %v1107_v6 }
  0x4a   : > { %254 = vperm.xlu1 %985, %v1239_v5   ;;  %316 = vperm.xlu0 %987, %v241_v2  }
  0x4b   : > { %900 = vmatpush3.bf16.msra.mxu1 %v897_v35 }
  0x4c   : > { %902 = vmatprep.subr.bf16.mxu1 %v901_v38 }
  0x4e   : > { %986 = vset.pattern.permute.xlu1 %v1105_v3  ;;  %319 = vperm.xlu0 %987, %v1234_v1  }
  0x4f   : > { %274 = vperm.xlu1 %986, %v1239_v5   ;;  %904 = vmatpush3.bf16.msra.mxu1 %v901_v38 }
  0x50   : > { %906 = vmatprep.subr.bf16.mxu1 %v905_v41 }
  0x52   : > { %322 = vperm.xlu0 %987, %v1239_v5  }
  0x53   : > { %988 = vset.pattern.permute.xlu1 %v1104_v0  ;;  %908 = vmatpush3.bf16.msra.mxu1 %v905_v41 }
  0x54   : > { %257 = vperm.xlu1 %988, %v244_v7   ;;  %910 = vmatprep.subr.bf16.mxu1 %v909_v44 }
  0x56   : > { %994 = vset.pattern.permute.xlu0 %v1108_v8 }
  0x57   : > { %367 = vperm.xlu0 %994, %v1234_v1   ;;  %912 = vmatpush3.bf16.msra.mxu1 %v909_v44 }
  0x58   : > { %989 = vset.pattern.permute.xlu1 %v1105_v3 }
  0x59   : > { %277 = vperm.xlu1 %989, %v244_v7  }
  0x5b   : > { %995 = vset.pattern.permute.xlu0 %v1109_v9 }
  0x5c   : > { %340 = vperm.xlu0 %995, %v241_v2  }
  0x5d   : > { %990 = vset.pattern.permute.xlu1 %v1106_v4 }
  0x5e   : > { %298 = vperm.xlu1 %990, %v1239_v5  }
  0x60   : > { %349 = vperm.xlu0 %995, %v244_v7  }
  0x62   : > { %301 = vperm.xlu1 %990, %v244_v7  }
  0x64   : > { %999 = vset.pattern.permute.xlu0 %v1110_v10 }
  0x65   : > { %412 = vperm.xlu0 %999, %v241_v2  }
  0x66   : > { %991 = vset.pattern.permute.xlu1 %v1109_v9 }
  0x67   : > { %343 = vperm.xlu1 %991, %v1234_v1  }
  0x69   : > { %1001 = vset.pattern.permute.xlu0 %v1111_v11 }
  0x6a   : > { %394 = vperm.xlu0 %1001, %v1239_v5  }
  0x6b   : > { %992 = vset.pattern.permute.xlu1 %v1108_v8 }
  0x6c   : > { %364 = vperm.xlu1 %992, %v241_v2  }
  0x6e   : > { %1004 = vset.pattern.permute.xlu0 %v1110_v10 }
  0x6f   : > { %421 = vperm.xlu0 %1004, %v244_v7  }
  0x70   : > { %993 = vset.pattern.permute.xlu1 %v1107_v6 }
  0x71   : > { %325 = vperm.xlu1 %993, %v244_v7  }
  0x75   : > { %996 = vset.pattern.permute.xlu1 %v1109_v9 }
  0x76   : > { %346 = vperm.xlu1 %996, %v1239_v5  }
  0x7a   : > { %997 = vset.pattern.permute.xlu1 %v1111_v11 }
  0x7b   : > { %388 = vperm.xlu1 %997, %v241_v2  }
  0x7f   : > { %391 = vperm.xlu1 %997, %v1234_v1  }
  0x83   : > { %998 = vset.pattern.permute.xlu1 %v1108_v8 }
  0x84   : > { %370 = vperm.xlu1 %998, %v1239_v5  }
  0x88   : > { %373 = vperm.xlu1 %998, %v244_v7  }
  0x8c   : > { %1000 = vset.pattern.permute.xlu1 %v1110_v10 }
  0x8d   : > { %415 = vperm.xlu1 %1000, %v1234_v1  }
  0x91   : > { %1002 = vset.pattern.permute.xlu1 %v1111_v11 }
  0x92   : > { %397 = vperm.xlu1 %1002, %v244_v7  }
  0x96   : > { %1003 = vset.pattern.permute.xlu1 %v1110_v10 }
  0x97   : > { %418 = vperm.xlu1 %1003, %v1239_v5  }
  0xba   : > { %v252_v45 = vpop.permute.xlu1 %251  ;;  %v249_v48 = vpop.permute.xlu0 %248 }
  0xbb   : > { %vm259_vm0 = vcmp.eq.s32.totalorder %v249_v48, %v1296_v63  ;;  %vm260_vm9 = vcmp.eq.s32.totalorder %v252_v45, %v1296_v63 }
  0xbc   : > { %v263_v2 = vsel %vm259_vm0, 1, %v1104_v0  ;;  %v264_v25 = vsel %vm260_vm9, 1, %v1104_v0 }
  0xbf   : > { %v272_v46 = vpop.permute.xlu1 %271  ;;  %v269_v50 = vpop.permute.xlu0 %268 }
  0xc0   : > { %vm279_vm1 = vcmp.eq.s32.totalorder %v269_v50, %v1296_v63  ;;  %vm280_vm7 = vcmp.eq.s32.totalorder %v272_v46, %v1296_v63 }
  0xc1   : > { %v283_v3 = vsel %vm279_vm1, 1, %v1104_v0  ;;  %v284_v22 = vsel %vm280_vm7, 1, %v1104_v0 }
  0xc2   : > { %v287_v6 = vadd.s32 %v283_v3, %v263_v2  ;;  %v288_v27 = vadd.s32 %v284_v22, %v264_v25 }
  0xc4   : > { %v293_v47 = vpop.permute.xlu1 %292  ;;  %v296_v52 = vpop.permute.xlu0 %295 }
  0xc5   : > { %vm303_vm2 = vcmp.eq.s32.totalorder %v293_v47, %v1296_v63  ;;  %vm304_vm10 = vcmp.eq.s32.totalorder %v296_v52, %v1296_v63 }
  0xc6   : > { %v307_v7 = vsel %vm303_vm2, 1, %v1104_v0  ;;  %v308_v26 = vsel %vm304_vm10, 1, %v1104_v0 }
  0xc7   : > { %v311_v10 = vadd.s32 %v307_v7, %v287_v6  ;;  %v312_v30 = vadd.s32 %v308_v26, %v288_v27 }
  0xc9   : > { %v1280_v49 = vpop.permute.xlu1 %254  ;;  %v317_v54 = vpop.permute.xlu0 %316 }
  0xca   : > { %vm327_vm3 = vcmp.eq.s32.totalorder %v317_v54, %v1296_v63  ;;  %vm261_vm0 = vcmp.eq.s32.totalorder %v1280_v49, %v1296_v63 }
  0xcb   : > { %v331_v9 = vsel %vm327_vm3, 1, %v1104_v0  ;;  %v265_v40 = vsel %vm261_vm0, 1, %v1104_v0 }
  0xcc   : > { %v335_v14 = vadd.s32 %v331_v9, %v311_v10 }
  0xcd   : > { %v320_v57 = vpop.permute.xlu0 %319 }
  0xce   : > { %v1282_v51 = vpop.permute.xlu1 %274  ;;  %vm328_vm11 = vcmp.eq.s32.totalorder %v320_v57, %v1296_v63 }
  0xcf   : > { %v332_v29 = vsel %vm328_vm11, 1, %v1104_v0  ;;  %vm281_vm15 = vcmp.eq.s32.totalorder %v1282_v51, %v1296_v63 }
  0xd0   : > { %v336_v33 = vadd.s32 %v332_v29, %v312_v30  ;;  %v285_v35 = vsel %vm281_vm15, 1, %v1104_v0 }
  0xd1   : > { %v1292_v59 = vpop.permute.xlu0 %322  ;;  %v289_v44 = vadd.s32 %v285_v35, %v265_v40 }
  0xd2   : > { %vm329_vm7 = vcmp.eq.s32.totalorder %v1292_v59, %v1296_v63 }
  0xd3   : > { %v1284_v53 = vpop.permute.xlu1 %257  ;;  %v333_v51 = vsel %vm329_vm7, 1, %v1104_v0 }
  0xd4   : > { %vm262_vm1 = vcmp.eq.s32.totalorder %v1284_v53, %v1296_v63 }
  0xd5   : > { %v266_v36 = vsel %vm262_vm1, 1, %v1104_v0 }
  0xd6   : > { %v1294_v62 = vpop.permute.xlu0 %367 }
  0xd7   : > { %vm376_vm3 = vcmp.eq.s32.totalorder %v1294_v62, %v1296_v63 }
  0xd8   : > { %v1286_v55 = vpop.permute.xlu1 %277  ;;  %v380_v41 = vsel %vm376_vm3, 1, %v1104_v0 }
  0xd9   : > { %vm282_vm14 = vcmp.eq.s32.totalorder %v1286_v55, %v1296_v63 }
  0xda   : > { %v286_v34 = vsel %vm282_vm14, 1, %v1104_v0 }
  0xdb   : > { %v341_v4 = vpop.permute.xlu0 %340  ;;  %v290_v42 = vadd.s32 %v286_v34, %v266_v36 }
  0xdc   : > { %vm351_vm4 = vcmp.eq.s32.totalorder %v341_v4, %v1296_v63 }
  0xdd   : > { %v1288_v56 = vpop.permute.xlu1 %298  ;;  %v355_v12 = vsel %vm351_vm4, 1, %v1104_v0 }
  0xde   : > { %v359_v16 = vadd.s32 %v355_v12, %v335_v14  ;;  %vm305_vm4 = vcmp.eq.s32.totalorder %v1288_v56, %v1296_v63 }
  0xdf   : > { %v1307_v8 = vpop.permute.xlu0 %349  ;;  %v309_v43 = vsel %vm305_vm4, 1, %v1104_v0 }
  0xe0   : > { %v313_v48 = vadd.s32 %v309_v43, %v289_v44 }
  0xe1   : > { %v1290_v58 = vpop.permute.xlu1 %301 }
  0xe2   : > { %vm306_vm2 = vcmp.eq.s32.totalorder %v1290_v58, %v1296_v63  ;;  %v337_v58 = vadd.s32 %v333_v51, %v313_v48 }
  0xe3   : > { %v310_v37 = vsel %vm306_vm2, 1, %v1104_v0 }
  0xe4   : > { %v413_v13 = vpop.permute.xlu0 %412  ;;  %v314_v46 = vadd.s32 %v310_v37, %v290_v42 }
  0xe5   : > { %vm423_vm6 = vcmp.eq.s32.totalorder %v413_v13, %v1296_v63 }
  0xe6   : > { %v344_v61 = vpop.permute.xlu1 %343  ;;  %v427_v20 = vsel %vm423_vm6, 1, %v1104_v0 }
  0xe7   : > { %vm352_vm13 = vcmp.eq.s32.totalorder %v344_v61, %v1296_v63 }
  0xe8   : > { %v356_v32 = vsel %vm352_vm13, 1, %v1104_v0 }
  0xe9   : > { %v360_v38 = vadd.s32 %v356_v32, %v336_v33  ;;  %v395_v50 = vpop.permute.xlu0 %394  ;;  %v770_v32 = vld [vmem:[%s1443_s4] ss:$0 sm:$0xff] }
  0xea   : > { %vm401_vm14 = vcmp.eq.s32.totalorder %v395_v50, %v1296_v63 }
  0xeb   : > { %v365_v1 = vpop.permute.xlu1 %364  ;;  %v384_v49 = vadd.s32 %v380_v41, %v360_v38 }
  0xec   : > { %vm375_vm5 = vcmp.eq.s32.totalorder %v365_v1, %v1296_v63 }
  0xed   : > { %v379_v15 = vsel %vm375_vm5, 1, %v1104_v0 }
  0xee   : > { %v383_v18 = vadd.s32 %v379_v15, %v359_v16  ;;  %v422_v61 = vpop.permute.xlu0 %421 }
  0xef   : > { %vm426_vm0 = vcmp.eq.s32.totalorder %v422_v61, %v1296_v63 }
  0xf0   : > { %v1303_v5 = vpop.permute.xlu1 %325  ;;  %v430_v10 = vsel %vm426_vm0, 1, %v1104_v0 }
  0xf1   : > { %vm330_vm5 = vcmp.eq.s32.totalorder %v1303_v5, %v1296_v63 }
  0xf2   : > { %v334_v45 = vsel %vm330_vm5, 1, %v1104_v0 }
  0xf3   : > { %v338_v52 = vadd.s32 %v334_v45, %v314_v46 }
  0xf5   : > { %v1312_v11 = vpop.permute.xlu1 %346 }
  0xf6   : > { %vm353_vm9 = vcmp.eq.s32.totalorder %v1312_v11, %v1296_v63 }
  0xf7   : > { %v357_v56 = vsel %vm353_vm9, 1, %v1104_v0 }
  0xf8   : > { %v361_v2 = vadd.s32 %v357_v56, %v337_v58 }
  0xfa   : > { %v389_v17 = vpop.permute.xlu1 %388 }
  0xfb   : > { %vm399_vm8 = vcmp.eq.s32.totalorder %v389_v17, %v1296_v63 }
  0xfc   : > { %v403_v19 = vsel %vm399_vm8, 1, %v1104_v0  ;;  %vm354_vm8 = vcmp.eq.s32.totalorder %v1307_v8, %v1296_v63  ;;  %v405_v8 = vsel %vm401_vm14, 1, %v1104_v0 }
  0xfd   : > { %v407_v21 = vadd.s32 %v403_v19, %v383_v18  ;;  %v358_v54 = vsel %vm354_vm8, 1, %v1104_v0  ;;  %v570_v18 = vld [vmem:[#allocation2 + $0x70] sm:$0xff]  ;;  %v571_v19 = vld [vmem:[#allocation2 + $0x78] sm:$0xff] }
  0xfe   : > { %v392_v23 = vpop.permute.xlu1 %391  ;;  %v362_v62 = vadd.s32 %v358_v54, %v338_v52 }
  0xff   : > { %v431_v24 = vadd.s32 %v427_v20, %v407_v21  ;;  %vm400_vm6 = vcmp.eq.s32.totalorder %v392_v23, %v1296_v63  ;;  %v913_v20 = vpack.c.bf16 %v571_v19, %v570_v18  ;;  %v765_v21 = vld [vmem:[%s1441_s2] ss:$0 sm:$0xff] }
 0x100   : > { %v404_v47 = vsel %vm400_vm6, 1, %v1104_v0 }
 0x101   : > { %v435_v28 = vcvt.s32.f32 %v431_v24  ;;  %v408_v55 = vadd.s32 %v404_v47, %v384_v49  ;;  %914 = vmatprep.subr.bf16.mxu1 %v913_v20 }
 0x102   : > { %916 = vmatpush3.bf16.msra.mxu1 %v913_v20 }
 0x103   : > { %v371_v31 = vpop.permute.xlu1 %370  ;;  %825 = vmatprep.mubr.msk.f32.mxu0 %vm454_vm12, %v435_v28 }
 0x104   : > { %vm377_vm11 = vcmp.eq.s32.totalorder %v371_v31, %v1296_v63 }
 0x105   : > { %v381_v1 = vsel %vm377_vm11, 1, %v1104_v0 }
 0x106   : > { %v385_v6 = vadd.s32 %v381_v1, %v361_v2 }
 0x107   : > { %v374_v39 = vpop.permute.xlu1 %373 }
 0x108   : > { %vm378_vm10 = vcmp.eq.s32.totalorder %v374_v39, %v1296_v63  ;;  %v409_v12 = vadd.s32 %v405_v8, %v385_v6 }
 0x109   : > { %v382_v59 = vsel %vm378_vm10, 1, %v1104_v0 }
 0x10a   : > { %v386_v5 = vadd.s32 %v382_v59, %v362_v62 }
 0x10c   : > { %v416_v53 = vpop.permute.xlu1 %415 }
 0x10d   : > { %vm424_vm13 = vcmp.eq.s32.totalorder %v416_v53, %v1296_v63 }
 0x10e   : > { %v428_v57 = vsel %vm424_vm13, 1, %v1104_v0 }
 0x10f   : > { %v432_v60 = vadd.s32 %v428_v57, %v408_v55 }
 0x111   : > { %v436_v3 = vcvt.s32.f32 %v432_v60  ;;  %v398_v4 = vpop.permute.xlu1 %397 }
 0x112   : > { %vm402_vm15 = vcmp.eq.s32.totalorder %v398_v4, %v1296_v63 }
 0x113   : > { %v406_v7 = vsel %vm402_vm15, 1, %v1104_v0  ;;  %826 = vmatmul.mubr.msk.f32.vlgmr.msra.gmra.mrb[0].mxu0 %vm454_vm12, %v436_v3 }
 0x114   : > { %v410_v9 = vadd.s32 %v406_v7, %v386_v5 }
 0x116   : > { %v419_v11 = vpop.permute.xlu1 %418  ;;  %v434_v13 = vadd.s32 %v430_v10, %v410_v9 }
 0x117   : > { %vm425_vm1 = vcmp.eq.s32.totalorder %v419_v11, %v1296_v63 }
 0x118   : > { %v429_v14 = vsel %vm425_vm1, 1, %v1104_v0  ;;  %v438_v17 = vcvt.s32.f32 %v434_v13 }
 0x119   : > { %v433_v15 = vadd.s32 %v429_v14, %v409_v12 }
 0x11b   : > { %v437_v16 = vcvt.s32.f32 %v433_v15 }
 0x11d   : > { %828 = vmatprep.mubr.msk.f32.mxu0 %vm454_vm12, %v437_v16 }
 0x11e   : > { %829 = vmatmul.mubr.msk.f32.gmra.mrb[2].mxu0 %vm454_vm12, %v438_v17 }
 0x1e6   : > { %v827_v63 = vpop.f32.mrb[0].mxu0 }
 0x1e7   : > { %v539_v22 = vadd.f32 %v827_v63, %v765_v21  ;;  %v533_v0 = vpop.f32.mrb[1].mxu0 }
 0x1e8   : > { %v534_v23 = vadd.f32 %v765_v21, %v533_v0 }
 0x1e9   : > { %v553_v25 = vmax.f32 %v539_v22, 0.0 }
 0x1ea   : > { %v552_v24 = vmax.f32 %v534_v23, 0.0 }
 0x1ec   : > { %863 = vmatprep.mubr.f32.mxu1 %v552_v24 }
 0x1ed   : > { %864 = vmatmul.mubr.f32.vlgmr.msra.gmra.mrb[0].mxu1 %v553_v25 }
 0x1f1   : > { %v830_v26 = vpop.f32.mrb[2].mxu0 }
 0x1f2   : > { %v549_v27 = vadd.f32 %v830_v26, %v765_v21  ;;  %v543_v28 = vpop.f32.mrb[3].mxu0 }
 0x1f3   : > { %v544_v29 = vadd.f32 %v765_v21, %v543_v28 }
 0x1f4   : > { %v555_v31 = vmax.f32 %v549_v27, 0.0 }
 0x1f5   : > { %v554_v30 = vmax.f32 %v544_v29, 0.0 }
 0x1f7   : > { %866 = vmatprep.mubr.f32.mxu1 %v554_v30 }
 0x1f8   : > { %867 = vmatmul.mubr.f32.gmra.mrb[2].mxu1 %v555_v31 }
 0x2c0   : > { %v865_v33 = vpop.f32.mrb[0].mxu1 }
 0x2c1   : > { %v651_v34 = vadd.f32 %v865_v33, %v770_v32  ;;  %v645_v35 = vpop.f32.mrb[1].mxu1 }
 0x2c2   : > { %v646_v36 = vadd.f32 %v770_v32, %v645_v35 }
 0x2c3   : > { %665 = vst [vmem:[%s233_s16 + $0x8] sm:$0xff] %v651_v34 }
 0x2c4   : > { %664 = vst [vmem:[%s233_s16] sm:$0xff] %v646_v36 }
 0x2cb   : > { %v868_v37 = vpop.f32.mrb[2].mxu1 }
 0x2cc   : > { %v661_v38 = vadd.f32 %v868_v37, %v770_v32  ;;  %v655_v39 = vpop.f32.mrb[3].mxu1 }
 0x2cd   : > { %v656_v40 = vadd.f32 %v770_v32, %v655_v39 }
 0x2ce   : > { %667 = vst [vmem:[%s233_s16 + $0x18] sm:$0xff] %v661_v38 }
 0x2cf   : > { %666 = vst [vmem:[%s233_s16 + $0x10] sm:$0xff] %v656_v40 }
 0x2d0   : > { %1046 = shalt.err (!%p1043_p7)
}
 0x2d1   : > { %s1047_s10 = scalar_lea.hbm %s1396_s6, 512  ;;  %s1051_s13 = scalar_lea.hbm %s1444_s5, 1024 }
 0x2d2   : > { %p1048_p8 = scmp.ne.s32.totalorder %s1396_s6, %s1047_s10  ;;  %p1052_p1 = scmp.lt.u32.totalorder %s1396_s6, %s1444_s5 }
 0x2d3   : > { %p1053_p0 = scmp.lt.u32.totalorder %s1051_s13, %s1047_s10  ;;  %p1055_p6 = scmp.lt.u32.totalorder %s1047_s10, %s1396_s6 }
 0x2d4   : > { %p1049_p11 = pnand %p1048_p8, %p1455_p9 }
 0x2d5   : > { %p1054_p5 = por %p1053_p0, %p1052_p1 }
 0x2d6   : > { %p1050_p13 = pneg %p1049_p11 }
 0x2d7   : > { %p1056_p10 = por %p1055_p6, %p1054_p5 }
 0x2d9   : > { %p1057_p12 = pnand %p1056_p10, %p1050_p13 }
 0x2db   : > { %1060 = shalt.err (!%p1057_p12)
}
 0x2dc   : > { %s1113_s16 = smov 128   ;;  %s1114_s23 = smov 8  }
 0x2dd   : > { %921 = dma.vmem_to_hbm [thread:$0]  (%p1455_p9), %s1391_s17, 512, %s1396_s6, %s1398_s8, %s1113_s16, %s1113_s16, %s1114_s23  }
 0x2de PF: > { %p933_p2 = scmp.ge.s32.totalorder %s1099_s21, 2  ;;  %s697_s25 = sand.u32 1, %s1087_s18  }
 0x2df   : > { %p1456_p3 = scmp.ne.s32.totalorder %s1449_s29, 0  ;;  %s698_s26 = scalar_lea.sflag [#allocation4], %s697_s25 }
 0x2e1   : > { %p928_p4 = pnand %p933_p2, %p1456_p3 }
 0x2e3   : > { %1082 = dma.done.wait (!%p928_p4), %s698_s26, 512  }
 0x2e4   : > { %1084 = vsyncadd (!%p928_p4), %s698_s26, 4294966784  ;;  %p16_p7 = scmp.ge.s32.totalorder %s1170_s24, 4   ;;  %s1457_s18 = smov %s1091_s19 }
 0x2e5   : > { %s1458_s19 = smov %s1095_s20  ;;  %s1459_s20 = smov %s1181_s27 }
 0x2e6   : > { %s1460_s21 = smov %s1170_s24  ;;  %18 = sbr.rel (!%p16_p7) target bundleno = 4 (0x4), region = 80 }
 0x2ed   :  { %703 = vsyncpa [#allocation3], 1 }
 0x2ee   :  { %705 = vsyncpa [#allocation3 + $0x1], 1 }
 0x2ef   :  { %706 = vsyncpa [#allocation4], 1 }
 0x2f0   :  { %708 = vsyncpa [#allocation4 + $0x1], 1 }

</bundles_post_ra>
